<compile_context>
chip_gen: v7x
topology: tpu7x:2x2x1
jax: 0.10.0
libtpu: 0.0.40
codegen_flags: <defaults>
</compile_context>

<pallas_src>
import jax
import jax.numpy as jnp
from jax import lax
from jax.experimental import pallas as pl
from jax.experimental.pallas import tpu as pltpu

EPS = 1e-15
_NEG_FILL = -1e9                      # sigmoid(_NEG_FILL) == 0.0 in f32
_LANE_BLOCK_MAX = 2048                # max lanes per tile (multiple of 128)
_LOGITS_BLOCK_BYTES = 4 * 1024 * 1024  # ~4 MiB logits tile target


def _round_up(x, m):
    return (x + m - 1) // m * m


def _dice_partial_kernel(logits_ref, labels_ref, part_ref):
    # logits_ref: (bn, C, bhw) float32 logits tile                    [VMEM]
    # labels_ref: (bn, 1, bhw) int32 class labels (-1 for padding)    [VMEM]
    # part_ref  : (1, 1, 8, 128) float32 partials:
    #             sublane 0 -> intersection, sublane 1 -> union       [VMEM]
    logits = logits_ref[...]
    labels = labels_ref[...]
    num_classes = logits.shape[1]

    probs = jax.nn.sigmoid(logits)                       # EUP/VPU, lane-dense

    # Implicit one-hot: channel iota (sublane axis) vs broadcast label row.
    ch_idx = lax.broadcasted_iota(jnp.int32, logits.shape, dimension=1)
    hit = ch_idx == labels                               # (bn, C, bhw) bool
    inter = jnp.sum(jnp.where(hit, probs, 0.0))

    # sum(onehot) == number of in-range labels (out-of-range / pad -> 0 row).
    in_range = jnp.logical_and(labels >= 0, labels < num_classes)
    onehot_sum = jnp.sum(in_range.astype(jnp.float32))
    union = jnp.sum(probs) + onehot_sum

    sub = lax.broadcasted_iota(jnp.int32, part_ref.shape, dimension=2)
    part_ref[...] = jnp.where(sub == 0, inter, jnp.where(sub == 1, union, 0.0))


def bce_soft_jaccard_dice_rate_change(outputs, targets, eps=EPS):
    """outputs: (N, C, H, W) float logits; targets: (N, H, W) integer labels."""
    N, C, H, W = outputs.shape
    HW = H * W

    logits = outputs.reshape(N, C, HW).astype(jnp.float32)
    labels = targets.reshape(N, 1, HW).astype(jnp.int32)

    # Lane-dense spatial block (multiple of 128), capped so one logits tile
    # stays within the VMEM budget even for large C.
    bhw = min(_LANE_BLOCK_MAX, _round_up(HW, 128))
    max_lane = max(128, (_LOGITS_BLOCK_BYTES // (C * 4)) // 128 * 128)
    bhw = min(bhw, max_lane)
    HW_pad = _round_up(HW, bhw)

    # Batch block sized so the logits tile is ~_LOGITS_BLOCK_BYTES.
    bn = max(1, _LOGITS_BLOCK_BYTES // (C * bhw * 4))
    bn = min(bn, N)
    N_pad = _round_up(N, bn)

    if HW_pad != HW or N_pad != N:
        # Pad logits with a very negative value (sigmoid -> 0) and labels with
        # -1 (never matches a channel, not counted) so padding is inert.
        logits = jnp.pad(
            logits, ((0, N_pad - N), (0, 0), (0, HW_pad - HW)),
            constant_values=_NEG_FILL)
        labels = jnp.pad(
            labels, ((0, N_pad - N), (0, 0), (0, HW_pad - HW)),
            constant_values=-1)

    gi = N_pad // bn
    gj = HW_pad // bhw

    partials = pl.pallas_call(
        _dice_partial_kernel,
        out_shape=jax.ShapeDtypeStruct((gi, gj, 8, 128), jnp.float32),
        grid=(gi, gj),
        in_specs=[
            pl.BlockSpec((bn, C, bhw), lambda i, j: (i, 0, j)),
            pl.BlockSpec((bn, 1, bhw), lambda i, j: (i, 0, j)),
        ],
        out_specs=pl.BlockSpec((1, 1, 8, 128), lambda i, j: (i, j, 0, 0)),
        compiler_params=pltpu.CompilerParams(
            dimension_semantics=("parallel", "parallel"),
            vmem_limit_bytes=32 * 1024 * 1024,
        ),
    )(logits, labels)

    # Tiny final reduction + dice2 formula in plain JAX.
    intersection = jnp.sum(partials[:, :, 0, 0])
    union = jnp.sum(partials[:, :, 1, 0])
    return 1.0 - (2.0 * intersection + eps) / (
        20.0 * (union - 2.0 * intersection) + 2.0 * intersection + eps
    )


def _reference(outputs, targets, eps=EPS):
    onehot = jax.nn.one_hot(targets, outputs.shape[1], axis=1, dtype=jnp.float32)
    probs = jax.nn.sigmoid(outputs)
    i = jnp.sum(probs * onehot)
    u = jnp.sum(probs) + jnp.sum(onehot)
    return 1.0 - (2.0 * i + eps) / (20.0 * (u - 2.0 * i) + 2.0 * i + eps)


if __name__ == "__main__":
    key = jax.random.PRNGKey(0)
    k1, k2 = jax.random.split(key)

    N, C, H, W = 2, 4, 16, 16
    outputs = jax.random.normal(k1, (N, C, H, W), dtype=jnp.float32)
    targets = jax.random.randint(k2, (N, H, W), 0, C, dtype=jnp.int32)

    loss = jax.jit(bce_soft_jaccard_dice_rate_change)(outputs, targets)
    jax.block_until_ready(loss)

    ref = _reference(outputs, targets)
    assert jnp.allclose(loss, ref, atol=1e-5, rtol=1e-5), (loss, ref)

    print("KERNEL_OK")
</pallas_src>

<mosaic_0001>
module attributes {stable_mosaic.version = 11 : i64} {
  func.func @_dice_partial_kernel(%arg0: i32, %arg1: i32, %arg2: memref<2x4x256xf32, #tpu.memory_space<vmem>>, %arg3: memref<2x1x256xi32, #tpu.memory_space<vmem>>, %arg4: memref<1x1x8x128xf32, #tpu.memory_space<vmem>>) attributes {dimension_semantics = [#tpu.dimension_semantics<parallel>, #tpu.dimension_semantics<parallel>], iteration_bounds = array<i64: 1, 1>, scalar_prefetch = 0 : i64, scratch_operands = 0 : i64, tpu.core_type = #tpu.core_type<tc>, window_params = [{transform_indices = @transform_0, window_bounds = array<i64: 2, 4, 256>}, {transform_indices = @transform_1, window_bounds = array<i64: 2, 1, 256>}, {transform_indices = @transform_2, window_bounds = array<i64: 1, 1, 8, 128>}]} {
    %c0 = arith.constant 0 : index
    %c0_0 = arith.constant 0 : index
    %c0_1 = arith.constant 0 : index
    %0 = vector.load %arg2[%c0, %c0_0, %c0_1] : memref<2x4x256xf32, #tpu.memory_space<vmem>>, vector<2x4x256xf32>
    %c0_2 = arith.constant 0 : index
    %c0_3 = arith.constant 0 : index
    %c0_4 = arith.constant 0 : index
    %1 = vector.load %arg3[%c0_2, %c0_3, %c0_4] : memref<2x1x256xi32, #tpu.memory_space<vmem>>, vector<2x1x256xi32>
    %2 = arith.negf %0 : vector<2x4x256xf32>
    %3 = math.exp %2 : vector<2x4x256xf32>
    %cst = arith.constant 1.000000e+00 : f32
    %4 = vector.broadcast %cst : f32 to vector<2x4x256xf32>
    %5 = arith.addf %4, %3 : vector<2x4x256xf32>
    %6 = arith.divf %4, %5 : vector<2x4x256xf32>
    %7 = tpu.iota {dimensions = array<i32: 1>} : vector<2x4x256xi32>
    %8 = vector.broadcast %1 : vector<2x1x256xi32> to vector<2x4x256xi32>
    %9 = arith.cmpi eq, %7, %8 : vector<2x4x256xi32>
    %cst_5 = arith.constant 0.000000e+00 : f32
    %10 = vector.broadcast %cst_5 : f32 to vector<2x4x256xf32>
    %11 = arith.select %9, %6, %10 : vector<2x4x256xi1>, vector<2x4x256xf32>
    %12 = vector.shape_cast %11 : vector<2x4x256xf32> to vector<1x2x4x256xf32>
    %cst_6 = arith.constant dense<0.000000e+00> : vector<1xf32>
    %13 = vector.multi_reduction <add>, %12, %cst_6 [1, 2, 3] : vector<1x2x4x256xf32> to vector<1xf32>
    %14 = vector.shape_cast %13 : vector<1xf32> to vector<1x1x1x1xf32>
    %15 = vector.extract %14[0, 0, 0, 0] : f32 from vector<1x1x1x1xf32>
    %c0_i32 = arith.constant 0 : i32
    %16 = vector.broadcast %c0_i32 : i32 to vector<2x1x256xi32>
    %17 = arith.cmpi sge, %1, %16 : vector<2x1x256xi32>
    %c4_i32 = arith.constant 4 : i32
    %18 = vector.broadcast %c4_i32 : i32 to vector<2x1x256xi32>
    %19 = arith.cmpi slt, %1, %18 : vector<2x1x256xi32>
    %20 = arith.andi %17, %19 : vector<2x1x256xi1>
    %21 = arith.extui %20 : vector<2x1x256xi1> to vector<2x1x256xi32>
    %22 = arith.sitofp %21 : vector<2x1x256xi32> to vector<2x1x256xf32>
    %23 = vector.shape_cast %22 : vector<2x1x256xf32> to vector<1x2x1x256xf32>
    %cst_7 = arith.constant dense<0.000000e+00> : vector<1xf32>
    %24 = vector.multi_reduction <add>, %23, %cst_7 [1, 2, 3] : vector<1x2x1x256xf32> to vector<1xf32>
    %25 = vector.shape_cast %24 : vector<1xf32> to vector<1x1x1x1xf32>
    %26 = vector.extract %25[0, 0, 0, 0] : f32 from vector<1x1x1x1xf32>
    %27 = vector.shape_cast %6 : vector<2x4x256xf32> to vector<1x2x4x256xf32>
    %cst_8 = arith.constant dense<0.000000e+00> : vector<1xf32>
    %28 = vector.multi_reduction <add>, %27, %cst_8 [1, 2, 3] : vector<1x2x4x256xf32> to vector<1xf32>
    %29 = vector.shape_cast %28 : vector<1xf32> to vector<1x1x1x1xf32>
    %30 = vector.extract %29[0, 0, 0, 0] : f32 from vector<1x1x1x1xf32>
    %31 = arith.addf %30, %26 : f32
    %32 = tpu.iota {dimensions = array<i32: 2>} : vector<1x1x8x128xi32>
    %c0_i32_9 = arith.constant 0 : i32
    %33 = vector.broadcast %c0_i32_9 : i32 to vector<1x1x8x128xi32>
    %34 = arith.cmpi eq, %32, %33 : vector<1x1x8x128xi32>
    %c1_i32 = arith.constant 1 : i32
    %35 = vector.broadcast %c1_i32 : i32 to vector<1x1x8x128xi32>
    %36 = arith.cmpi eq, %32, %35 : vector<1x1x8x128xi32>
    %cst_10 = arith.constant 0.000000e+00 : f32
    %37 = vector.broadcast %31 : f32 to vector<1x1x8x128xf32>
    %38 = vector.broadcast %cst_10 : f32 to vector<1x1x8x128xf32>
    %39 = arith.select %36, %37, %38 : vector<1x1x8x128xi1>, vector<1x1x8x128xf32>
    %40 = vector.broadcast %15 : f32 to vector<1x1x8x128xf32>
    %41 = arith.select %34, %40, %39 : vector<1x1x8x128xi1>, vector<1x1x8x128xf32>
    %c0_11 = arith.constant 0 : index
    %c0_12 = arith.constant 0 : index
    %c0_13 = arith.constant 0 : index
    %c0_14 = arith.constant 0 : index
    %42 = vector.load %arg4[%c0_11, %c0_12, %c0_13, %c0_14] : memref<1x1x8x128xf32, #tpu.memory_space<vmem>>, vector<1x1x8x128xf32>
    tpu.vector_store %arg4[%c0_11, %c0_12, %c0_13, %c0_14], %41 {strides = array<i32>} : memref<1x1x8x128xf32, #tpu.memory_space<vmem>>, vector<1x1x8x128xf32>,
    return
  }
  func.func @transform_0(%arg0: i32, %arg1: i32) -> (i32, i32, i32) {
    %c0_i32 = arith.constant 0 : i32
    %c0_i32_0 = arith.constant 0 : i32
    return %arg0, %c0_i32, %arg1 : i32, i32, i32
  }
  func.func @transform_1(%arg0: i32, %arg1: i32) -> (i32, i32, i32) {
    %c0_i32 = arith.constant 0 : i32
    %c0_i32_0 = arith.constant 0 : i32
    return %arg0, %c0_i32, %arg1 : i32, i32, i32
  }
  func.func @transform_2(%arg0: i32, %arg1: i32) -> (i32, i32, i32, i32) {
    %c0_i32 = arith.constant 0 : i32
    %c0_i32_0 = arith.constant 0 : i32
    %c0_i32_1 = arith.constant 0 : i32
    return %arg0, %arg1, %c0_i32, %c0_i32_0 : i32, i32, i32, i32
  }
}

</mosaic_0001>

<bundles_post_ra>
// kernel: bce_soft_jaccard_dice_rate_change.1
= control target key start
LH: loop header
LB: loop body
LE: loop exit
PB: predicated region body
PF: predicated region fallthrough
CT: control target
= control target key end

     0   :  { %v27_v4 = vlaneseq  ;;  %v172_v14 = vmov 0.0   ;;  %vm108_vm6 = vcmask 1040384   ;;  %vm59_vm7 = vcmask 1043456   ;;  %s249_s0 = inlined_call_operand.vmem [shape: f32[2,4,256], index: 0, kind: input, shape index: {}]   ;;  %s250_s1 = inlined_call_operand.vmem [shape: s32[2,1,256], index: 1, kind: input, shape index: {}]   ;;  %s251_s2 = inlined_call_operand.vmem [shape: f32[1,1,8,128], index: 2, kind: output, shape index: {}]  }
   0x1   :  { %v11_v0 = vld [vmem:[%s249_s0] sm:$0xff]  ;;  %v12_v1 = vld [vmem:[%s249_s0 + $0x8] sm:$0xff] }
   0x2   :  { %v153_v2 = vmul.f32 -1.442695, %v11_v0  ;;  %v154_v3 = vmul.f32 -1.442695, %v12_v1  ;;  %v13_v5 = vld [vmem:[%s250_s1] sm:$0x3] }
   0x3   :  { %v197_v6 = vshrl.u32 %v27_v4, 7  ;;  %vm76_vm0 = vcmp.ge.s32.totalorder %v13_v5, 0  ;;  %vm78_vm1 = vcmp.lt.s32.totalorder %v13_v5, 4  ;;  %v14_v10 = vld [vmem:[%s250_s1 + $0x2] sm:$0x3] }
   0x4   :  { %164 = vpow2.f32 %v153_v2  ;;  %vm77_vm2 = vcmp.ge.s32.totalorder %v14_v10, 0  ;;  %vm79_vm3 = vcmp.lt.s32.totalorder %v14_v10, 4  ;;  %vm80_vm4 = vmand %vm76_vm0, %vm78_vm1 }
   0x5   :  { %166 = vpow2.f32 %v154_v3  ;;  %v31_v12 = vsub.s32 0, %v197_v6  ;;  %v35_v13 = vsub.s32 1, %v197_v6  ;;  %vm81_vm5 = vmand %vm77_vm2, %vm79_vm3  ;;  %v155_v15 = vsel %vm80_vm4, 1.0, %v172_v14 }
   0x6   :  { %v156_v18 = vsel %vm81_vm5, 1.0, %v172_v14  ;;  %vm143_vm12 = vcmp.eq.s32.totalorder %v197_v6, 1  ;;  %vm142_vm13 = vcmp.eq.s32.totalorder %v197_v6, 0 }
   0x7   :  { %v32_v16 = vrot.slane %v13_v5, %v31_v12  ;;  %v40_v17 = vrot.slane %v14_v10, %v31_v12  ;;  %v36_v19 = vrot.slane %v13_v5, %v35_v13  ;;  %v91_v20 = vrot.slane %v155_v15, %v31_v12 }
   0x8   :  { %v95_v21 = vrot.slane %v155_v15, %v35_v13  ;;  %v44_v22 = vrot.slane %v14_v10, %v35_v13  ;;  %v99_v24 = vrot.slane %v156_v18, %v31_v12  ;;  %v103_v28 = vrot.slane %v156_v18, %v35_v13 }
   0x9   :  { %vm205_vm8 = vcmp.eq.s32.totalorder %v197_v6, %v32_v16  ;;  %vm210_vm9 = vcmp.eq.s32.totalorder %v197_v6, %v40_v17  ;;  %vm215_vm10 = vcmp.eq.s32.totalorder %v197_v6, %v36_v19  ;;  %v109_v29 = vsel %vm108_vm6, %v91_v20, 0.0 }
   0xa   :  { %v110_v30 = vsel %vm108_vm6, %v95_v21, 0.0  ;;  %vm223_vm11 = vcmp.eq.s32.totalorder %v197_v6, %v44_v22  ;;  %v112_v39 = vsel %vm108_vm6, %v99_v24, 0.0  ;;  %v114_v55 = vsel %vm108_vm6, %v103_v28, 0.0 }
   0xb   :  { %v111_v43 = vadd.f32 %v110_v30, %v109_v29 }
   0xd   :  { %v113_v53 = vadd.f32 %v112_v39, %v111_v43 }
   0xe   :  { %v165_v7 = vpop.eup %164 }
   0xf   :  { %v167_v8 = vpop.eup %166  ;;  %v21_v9 = vadd.f32 1.0, %v165_v7  ;;  %v115_v57 = vadd.f32 %v114_v55, %v113_v53 }
  0x10   :  { %v22_v11 = vadd.f32 1.0, %v167_v8 }
  0x11   :  { %168 = vrcp.f32 %v21_v9 }
  0x12   :  { %170 = vrcp.f32 %v22_v11 }
  0x1b   :  { %v169_v26 = vpop.eup %168 }
  0x1c   :  { %v171_v31 = vpop.eup %170  ;;  %v51_v32 = vcombine.high %v169_v26, %v169_v26  ;;  %v125_v33 = vsel %vm59_vm7, %v169_v26, 0.0  ;;  %v55_v35 = vsel %vm205_vm8, %v169_v26, 0.0 }
  0x1d   :  { %v52_v36 = vcombine.high %v171_v31, %v171_v31  ;;  %v57_v37 = vsel %vm210_vm9, %v171_v31, 0.0  ;;  %v60_v38 = vsel %vm59_vm7, %v55_v35, 0.0  ;;  %v128_v41 = vsel %vm59_vm7, %v171_v31, 0.0 }
  0x1e   :  { %v126_v40 = vsel %vm59_vm7, %v51_v32, 0.0  ;;  %v56_v42 = vsel %vm215_vm10, %v51_v32, 0.0  ;;  %v63_v47 = vsel %vm59_vm7, %v57_v37, 0.0 }
  0x1f   :  { %v127_v44 = vadd.f32 %v126_v40, %v125_v33  ;;  %v58_v45 = vsel %vm223_vm11, %v52_v36, 0.0  ;;  %v61_v46 = vsel %vm59_vm7, %v56_v42, 0.0  ;;  %v130_v48 = vsel %vm59_vm7, %v52_v36, 0.0 }
  0x20   :  { %v62_v49 = vadd.f32 %v61_v46, %v60_v38  ;;  %v65_v51 = vsel %vm59_vm7, %v58_v45, 0.0 }
  0x21   :  { %v129_v50 = vadd.f32 %v128_v41, %v127_v44 }
  0x22   :  { %v64_v52 = vadd.f32 %v63_v47, %v62_v49 }
  0x23   :  { %v131_v54 = vadd.f32 %v130_v48, %v129_v50 }
  0x24   :  { %v66_v56 = vadd.f32 %v65_v51, %v64_v52 }
  0x25   :  { %132 = vadd.xlane.f32.xlu1 %v131_v54 }
  0x26   :  { %67 = vadd.xlane.f32.xlu0 %v66_v56 }
  0x2a   :  { %116 = vadd.xlane.f32.xlu0 %v115_v57 }
  0xb2   :  { %v133_v58 = vpop.xlane.xlu1 %132 }
  0xb3   :  { %v134_v59 = vrot.slane %v133_v58, 4  ;;  %v68_v60 = vpop.xlane.xlu0 %67 }
  0xb4   :  { %v69_v61 = vrot.slane %v68_v60, 4 }
  0xb5   :  { %v135_v62 = vadd.f32 %v134_v59, %v133_v58 }
  0xb6   :  { %v70_v63 = vadd.f32 %v69_v61, %v68_v60 }
  0xb7   :  { %v136_v0 = vrot.slane %v135_v62, 2  ;;  %v117_v1 = vpop.xlane.xlu0 %116 }
  0xb8   :  { %v71_v2 = vrot.slane %v70_v63, 2  ;;  %v118_v3 = vrot.slane %v117_v1, 4 }
  0xb9   :  { %v137_v7 = vadd.f32 %v136_v0, %v135_v62 }
  0xba   :  { %v119_v4 = vadd.f32 %v118_v3, %v117_v1  ;;  %v72_v5 = vadd.f32 %v71_v2, %v70_v63 }
  0xbb   :  { %v138_v12 = vrot.slane %v137_v7, 1 }
  0xbc   :  { %v120_v8 = vrot.slane %v119_v4, 2  ;;  %v73_v9 = vrot.slane %v72_v5, 1 }
  0xbd   :  { %v139_v15 = vadd.f32 %v138_v12, %v137_v7 }
  0xbe   :  { %v121_v10 = vadd.f32 %v120_v8, %v119_v4  ;;  %v74_v11 = vadd.f32 %v73_v9, %v72_v5 }
  0xc0   :  { %157 = vpush %v74_v11  ;;  %v122_v13 = vrot.slane %v121_v10, 1 }
  0xc2   :  { %v123_v14 = vadd.f32 %v122_v13, %v121_v10 }
  0xc4   :  { %159 = vpush %v123_v14 }
  0xc5   :  { %161 = vpush %v139_v15 }
  0xf1   :  { %s158_s0 = spop %157 }
  0xf2   :  { %v146_v17 = vstv %s158_s0 }
  0xf5   :  { %s160_s1 = spop %159 }
  0xf6   :  { %s162_s17 = spop %161 }
  0xf7   :  { %s141_s18 = sadd.f32 %s162_s17, %s160_s1 }
  0xf9   :  { %v144_v16 = vstv %s141_s18 }
  0xfa   :  { %v145_v18 = vsel %vm143_vm12, %v144_v16, 0.0 }
  0xfb   :  { %v147_v19 = vsel %vm142_vm13, %v146_v17, %v145_v18 }
  0xfc   :  { %148 = vst [vmem:[%s251_s2] sm:$0xff] %v147_v19 }

</bundles_post_ra>
